<compile_context>
chip_gen: v6e
topology: v6e:2x2x1
jax: 0.10.0
libtpu: 0.0.40
codegen_flags: <defaults>
</compile_context>

<pallas_src>
import functools

import jax
import jax.numpy as jnp
from jax.experimental import pallas as pl
from jax.experimental.pallas import tpu as pltpu

LANE = 128          # lane-dense padded width for the hidden / output dims
IN_FEATURES = 784   # 1 * 28 * 28
OUT_FEATURES = 10


def _round_up(n, m):
    return ((n + m - 1) // m) * m


def _mlp_kernel(x_ref, w1_ref, b1_ref, w2_ref, b2_ref, w3_ref, b3_ref, out_ref):
    # fc1: bf16 x bf16 -> f32 accumulate on the MXU, then bias + ReLU on the VPU.
    h1 = jnp.dot(x_ref[...], w1_ref[...], preferred_element_type=jnp.float32)
    h1 = jnp.maximum(h1 + b1_ref[...], 0.0)
    # fc2 + ReLU (padded lanes are exactly zero: zero cols in w1/b1 -> relu(0) = 0,
    # and the corresponding rows of w2 are zero).
    h2 = jnp.dot(h1, w2_ref[...], preferred_element_type=jnp.float32)
    h2 = jnp.maximum(h2 + b2_ref[...], 0.0)
    # fc3, lane-dense 128-wide output (cols >= 10 are zero-padded).
    h3 = jnp.dot(h2, w3_ref[...], preferred_element_type=jnp.float32)
    out_ref[...] = (h3 + b3_ref[...]).astype(out_ref.dtype)


def init_params(key):
    """nn.Linear-equivalent init. Weights stored as [in, out] (transpose of PyTorch),
    biases as [1, out] for in-kernel broadcast."""
    ks = jax.random.split(key, 6)

    def linear(kw, kb, fan_in, fan_out):
        bound = 1.0 / jnp.sqrt(fan_in)
        w = jax.random.uniform(kw, (fan_in, fan_out), jnp.float32, -bound, bound)
        b = jax.random.uniform(kb, (1, fan_out), jnp.float32, -bound, bound)
        return w, b

    w1, b1 = linear(ks[0], ks[1], IN_FEATURES, 16)
    w2, b2 = linear(ks[2], ks[3], 16, 16)
    w3, b3 = linear(ks[4], ks[5], 16, OUT_FEATURES)
    return (w1, b1, w2, b2, w3, b3)


def prepare_params(params):
    """Zero-pad hidden/output widths to 128 lanes; cast the fc1 weight to bf16.

    Zero padding keeps the math identical to the unpadded network: padded h1/h2 lanes
    are relu(0 + 0) = 0 and the padded rows of w2/w3 are zero.
    """
    w1, b1, w2, b2, w3, b3 = params

    def pad_to(a, rows, cols):
        return jnp.pad(a, ((0, rows - a.shape[0]), (0, cols - a.shape[1])))

    w1p = pad_to(w1, IN_FEATURES, LANE).astype(jnp.bfloat16)
    b1p = pad_to(b1, 1, LANE)
    w2p = pad_to(w2, LANE, LANE)
    b2p = pad_to(b2, 1, LANE)
    w3p = pad_to(w3, LANE, LANE)
    b3p = pad_to(b3, 1, LANE)
    return (w1p, b1p, w2p, b2p, w3p, b3p)


@functools.partial(jax.jit, static_argnames=("tb",))
def small_mnist_net(x, padded_params, *, tb=1024):
    """x: [B, 1, 28, 28] float32 (NCHW). Returns logits [B, 10] float32."""
    w1, b1, w2, b2, w3, b3 = padded_params
    B = x.shape[0]
    x_flat = x.reshape(B, -1).astype(jnp.bfloat16)  # == torch.flatten(x, 1), bf16 for HBM BW

    # Batch tile: multiple of 8 (f32 sublane); pad the batch so the grid divides evenly.
    TB = _round_up(min(tb, _round_up(B, 8)), 8)
    Bp = _round_up(B, TB)
    if Bp != B:
        x_flat = jnp.pad(x_flat, ((0, Bp - B), (0, 0)))

    grid = (Bp // TB,)
    flops = 2 * Bp * (IN_FEATURES * LANE + LANE * LANE + LANE * LANE)
    bytes_accessed = (Bp * IN_FEATURES * 2          # x (bf16)
                      + Bp * LANE * 4               # padded logits out (f32)
                      + IN_FEATURES * LANE * 2      # w1 (bf16)
                      + 2 * LANE * LANE * 4         # w2, w3 (f32)
                      + 3 * LANE * 4)               # biases

    resident = lambda i: (0, 0)  # weights/biases: same block every step -> stay VMEM-resident

    out = pl.pallas_call(
        _mlp_kernel,
        out_shape=jax.ShapeDtypeStruct((Bp, LANE), jnp.float32),
        grid=grid,
        in_specs=[
            pl.BlockSpec((TB, IN_FEATURES), lambda i: (i, 0)),   # x: batch-tiled, double-buffered
            pl.BlockSpec((IN_FEATURES, LANE), resident),         # w1 (bf16)
            pl.BlockSpec((1, LANE), resident),                   # b1
            pl.BlockSpec((LANE, LANE), resident),                # w2
            pl.BlockSpec((1, LANE), resident),                   # b2
            pl.BlockSpec((LANE, LANE), resident),                # w3
            pl.BlockSpec((1, LANE), resident),                   # b3
        ],
        out_specs=pl.BlockSpec((TB, LANE), lambda i: (i, 0)),
        compiler_params=pltpu.CompilerParams(
            dimension_semantics=("parallel",),   # batch tiles shard across TCs (v7x megacore)
            vmem_limit_bytes=48 << 20,
        ),
        cost_estimate=pl.CostEstimate(
            flops=flops, transcendentals=0, bytes_accessed=bytes_accessed),
    )(x_flat, w1, b1, w2, b2, w3, b3)

    return out[:B, :OUT_FEATURES]


def _reference(x, params):
    """Pure-JAX reference using the same bf16-input / f32-accumulate recipe."""
    w1, b1, w2, b2, w3, b3 = params
    xf = x.reshape(x.shape[0], -1).astype(jnp.bfloat16)
    h1 = jnp.maximum(
        jnp.dot(xf, w1.astype(jnp.bfloat16), preferred_element_type=jnp.float32) + b1, 0.0)
    h2 = jnp.maximum(jnp.dot(h1, w2, preferred_element_type=jnp.float32) + b2, 0.0)
    return jnp.dot(h2, w3, preferred_element_type=jnp.float32) + b3


if __name__ == "__main__":
    key = jax.random.PRNGKey(0)
    k_x, k_p = jax.random.split(key)

    params = init_params(k_p)
    padded = prepare_params(params)

    # Multi-step grid (4 batch tiles of 16 rows) exercises the pipelined path.
    B = 64
    x = jax.random.normal(k_x, (B, 1, 28, 28), jnp.float32)
    out = jax.block_until_ready(small_mnist_net(x, padded, tb=16))
    ref = _reference(x, params)
    assert out.shape == (B, OUT_FEATURES), out.shape
    # bf16 inputs + f32 accumulation -> small numeric differences vs. the XLA reference.
    assert jnp.allclose(out, ref, atol=2e-2, rtol=2e-2), "mismatch vs JAX reference"

    # Batch that does not divide the tile -> exercises the pad/slice path.
    B2 = 37
    x2 = jax.random.normal(k_x, (B2, 1, 28, 28), jnp.float32)
    out2 = jax.block_until_ready(small_mnist_net(x2, padded, tb=16))
    ref2 = _reference(x2, params)
    assert out2.shape == (B2, OUT_FEATURES), out2.shape
    assert jnp.allclose(out2, ref2, atol=2e-2, rtol=2e-2), "mismatch vs JAX reference (odd batch)"

    print("KERNEL_OK")
</pallas_src>

<mosaic_0001>
module attributes {stable_mosaic.version = 11 : i64} {
  func.func @_mlp_kernel(%arg0: i32, %arg1: memref<16x784xbf16, #tpu.memory_space<vmem>>, %arg2: memref<784x128xbf16, #tpu.memory_space<vmem>>, %arg3: memref<1x128xf32, #tpu.memory_space<vmem>>, %arg4: memref<128x128xf32, #tpu.memory_space<vmem>>, %arg5: memref<1x128xf32, #tpu.memory_space<vmem>>, %arg6: memref<128x128xf32, #tpu.memory_space<vmem>>, %arg7: memref<1x128xf32, #tpu.memory_space<vmem>>, %arg8: memref<16x128xf32, #tpu.memory_space<vmem>>) attributes {dimension_semantics = [#tpu.dimension_semantics<parallel>], iteration_bounds = array<i64: 4>, scalar_prefetch = 0 : i64, scratch_operands = 0 : i64, tpu.core_type = #tpu.core_type<tc>, window_params = [{transform_indices = @transform_0, window_bounds = array<i64: 16, 784>}, {pipeline_mode = #tpu.pipeline_mode<synchronous>, transform_indices = @transform_1, window_bounds = array<i64: 784, 128>}, {pipeline_mode = #tpu.pipeline_mode<synchronous>, transform_indices = @transform_2, window_bounds = array<i64: 1, 128>}, {pipeline_mode = #tpu.pipeline_mode<synchronous>, transform_indices = @transform_3, window_bounds = array<i64: 128, 128>}, {pipeline_mode = #tpu.pipeline_mode<synchronous>, transform_indices = @transform_4, window_bounds = array<i64: 1, 128>}, {pipeline_mode = #tpu.pipeline_mode<synchronous>, transform_indices = @transform_5, window_bounds = array<i64: 128, 128>}, {pipeline_mode = #tpu.pipeline_mode<synchronous>, transform_indices = @transform_6, window_bounds = array<i64: 1, 128>}, {transform_indices = @transform_7, window_bounds = array<i64: 16, 128>}]} {
    %c0 = arith.constant 0 : index
    %c0_0 = arith.constant 0 : index
    %0 = vector.load %arg1[%c0, %c0_0] : memref<16x784xbf16, #tpu.memory_space<vmem>>, vector<16x784xbf16>
    %c0_1 = arith.constant 0 : index
    %c0_2 = arith.constant 0 : index
    %1 = vector.load %arg2[%c0_1, %c0_2] : memref<784x128xbf16, #tpu.memory_space<vmem>>, vector<784x128xbf16>
    %cst = arith.constant dense<0.000000e+00> : vector<16x128xf32>
    %2 = tpu.matmul %0, %1, %cst {dimension_numbers = #tpu.dot_dimension_numbers<[1], [0], [0], [1], [0, 0, 1, 1], [], []>} : vector<16x784xbf16>, vector<784x128xbf16>, vector<16x128xf32> -> vector<16x128xf32>
    %c0_3 = arith.constant 0 : index
    %c0_4 = arith.constant 0 : index
    %3 = vector.load %arg3[%c0_3, %c0_4] : memref<1x128xf32, #tpu.memory_space<vmem>>, vector<1x128xf32>
    %4 = vector.broadcast %3 : vector<1x128xf32> to vector<16x128xf32>
    %5 = arith.addf %2, %4 : vector<16x128xf32>
    %cst_5 = arith.constant 0.000000e+00 : f32
    %6 = vector.broadcast %cst_5 : f32 to vector<16x128xf32>
    %7 = arith.maximumf %5, %6 : vector<16x128xf32>
    %c0_6 = arith.constant 0 : index
    %c0_7 = arith.constant 0 : index
    %8 = vector.load %arg4[%c0_6, %c0_7] : memref<128x128xf32, #tpu.memory_space<vmem>>, vector<128x128xf32>
    %cst_8 = arith.constant dense<0.000000e+00> : vector<16x128xf32>
    %9 = tpu.matmul %7, %8, %cst_8 {dimension_numbers = #tpu.dot_dimension_numbers<[1], [0], [0], [1], [0, 0, 1, 1], [], []>} : vector<16x128xf32>, vector<128x128xf32>, vector<16x128xf32> -> vector<16x128xf32>
    %c0_9 = arith.constant 0 : index
    %c0_10 = arith.constant 0 : index
    %10 = vector.load %arg5[%c0_9, %c0_10] : memref<1x128xf32, #tpu.memory_space<vmem>>, vector<1x128xf32>
    %11 = vector.broadcast %10 : vector<1x128xf32> to vector<16x128xf32>
    %12 = arith.addf %9, %11 : vector<16x128xf32>
    %cst_11 = arith.constant 0.000000e+00 : f32
    %13 = vector.broadcast %cst_11 : f32 to vector<16x128xf32>
    %14 = arith.maximumf %12, %13 : vector<16x128xf32>
    %c0_12 = arith.constant 0 : index
    %c0_13 = arith.constant 0 : index
    %15 = vector.load %arg6[%c0_12, %c0_13] : memref<128x128xf32, #tpu.memory_space<vmem>>, vector<128x128xf32>
    %cst_14 = arith.constant dense<0.000000e+00> : vector<16x128xf32>
    %16 = tpu.matmul %14, %15, %cst_14 {dimension_numbers = #tpu.dot_dimension_numbers<[1], [0], [0], [1], [0, 0, 1, 1], [], []>} : vector<16x128xf32>, vector<128x128xf32>, vector<16x128xf32> -> vector<16x128xf32>
    %c0_15 = arith.constant 0 : index
    %c0_16 = arith.constant 0 : index
    %17 = vector.load %arg7[%c0_15, %c0_16] : memref<1x128xf32, #tpu.memory_space<vmem>>, vector<1x128xf32>
    %18 = vector.broadcast %17 : vector<1x128xf32> to vector<16x128xf32>
    %19 = arith.addf %16, %18 : vector<16x128xf32>
    %c0_17 = arith.constant 0 : index
    %c0_18 = arith.constant 0 : index
    %20 = vector.load %arg8[%c0_17, %c0_18] : memref<16x128xf32, #tpu.memory_space<vmem>>, vector<16x128xf32>
    tpu.vector_store %arg8[%c0_17, %c0_18], %19 {strides = array<i32>} : memref<16x128xf32, #tpu.memory_space<vmem>>, vector<16x128xf32>,
    return
  }
  func.func @transform_0(%arg0: i32) -> (i32, i32) {
    %c0_i32 = arith.constant 0 : i32
    %c0_i32_0 = arith.constant 0 : i32
    return %arg0, %c0_i32 : i32, i32
  }
  func.func @transform_1(%arg0: i32) -> (i32, i32) {
    %c0_i32 = arith.constant 0 : i32
    %c0_i32_0 = arith.constant 0 : i32
    %c0_i32_1 = arith.constant 0 : i32
    return %c0_i32, %c0_i32_0 : i32, i32
  }
  func.func @transform_2(%arg0: i32) -> (i32, i32) {
    %c0_i32 = arith.constant 0 : i32
    %c0_i32_0 = arith.constant 0 : i32
    %c0_i32_1 = arith.constant 0 : i32
    return %c0_i32, %c0_i32_0 : i32, i32
  }
  func.func @transform_3(%arg0: i32) -> (i32, i32) {
    %c0_i32 = arith.constant 0 : i32
    %c0_i32_0 = arith.constant 0 : i32
    %c0_i32_1 = arith.constant 0 : i32
    return %c0_i32, %c0_i32_0 : i32, i32
  }
  func.func @transform_4(%arg0: i32) -> (i32, i32) {
    %c0_i32 = arith.constant 0 : i32
    %c0_i32_0 = arith.constant 0 : i32
    %c0_i32_1 = arith.constant 0 : i32
    return %c0_i32, %c0_i32_0 : i32, i32
  }
  func.func @transform_5(%arg0: i32) -> (i32, i32) {
    %c0_i32 = arith.constant 0 : i32
    %c0_i32_0 = arith.constant 0 : i32
    %c0_i32_1 = arith.constant 0 : i32
    return %c0_i32, %c0_i32_0 : i32, i32
  }
  func.func @transform_6(%arg0: i32) -> (i32, i32) {
    %c0_i32 = arith.constant 0 : i32
    %c0_i32_0 = arith.constant 0 : i32
    %c0_i32_1 = arith.constant 0 : i32
    return %c0_i32, %c0_i32_0 : i32, i32
  }
  func.func @transform_7(%arg0: i32) -> (i32, i32) {
    %c0_i32 = arith.constant 0 : i32
    %c0_i32_0 = arith.constant 0 : i32
    return %arg0, %c0_i32 : i32, i32
  }
}

</mosaic_0001>

<bundles_post_ra>
// kernel: small_mnist_net.1
= control target key start
LH: loop header
LB: loop body
LE: loop exit
PB: predicated region body
PF: predicated region fallthrough
CT: control target
= control target key end

     0   :  { %s1525_s24 = smov 0   ;;  %s1809_s0 = inlined_call_operand.vmem [shape: bf16[64,784], index: 0, kind: input, shape index: {}]   ;;  %s1810_s1 = inlined_call_operand.vmem [shape: bf16[784,128], index: 1, kind: input, shape index: {}]   ;;  %s1811_s2 = inlined_call_operand.vmem [shape: f32[1,128], index: 2, kind: input, shape index: {}]   ;;  %s1812_s3 = inlined_call_operand.vmem [shape: f32[128,128], index: 3, kind: input, shape index: {}]   ;;  %s1813_s4 = inlined_call_operand.vmem [shape: f32[1,128], index: 4, kind: input, shape index: {}]   ;;  %s1814_s5 = inlined_call_operand.vmem [shape: f32[128,128], index: 5, kind: input, shape index: {}]   ;;  %s1815_s6 = inlined_call_operand.vmem [shape: f32[1,128], index: 6, kind: input, shape index: {}]   ;;  %s1816_s7 = inlined_call_operand.vmem [shape: f32[64,128], index: 7, kind: output, shape index: {}]  }
   0x1 LB: > { %s1154_s25 = sadd.s32 4294967295, %s1481_s24   ;;  %p1158_p0 = scmp.ge.s32.totalorder %s1481_s24, 1  ;;  %s1481_s24 = sphi %s1525_s24, %s17_s24  }
   0x2   : > { %p239_p1 = scmp.lt.s32.totalorder %s1481_s24, 5 }
   0x4   : > { %p240_p2 = pnand %p1158_p0, %p239_p1 }
   0x5   : > { %s1159_s10 = sshll.u32 (!%p240_p2), %s1154_s25, 1 }
   0x6   : > { %243 = sbr.rel (%p240_p2) target bundleno = 681 (0x2a9), region = 48  ;;  %p273_p3 = scmp.lt.s32.totalorder (!%p240_p2), %s1159_s10, 7 }
   0xb   : > { %v1416_v0 = vld [vmem:[%s1810_s1 + $0x78] sm:$0xff]   ;;  %v1420_v4 = vld [vmem:[%s1810_s1 + $0x70] sm:$0xff]   ;;  %v1424_v8 = vld [vmem:[%s1810_s1 + $0x68] sm:$0xff]   ;;  %s1818_s10 = smov (!%p273_p3, %s1159_s10), 7  ;;  %v1483_v38 = vmov 0.0   ;;  %vm1484_vm0 = vmmov 0  }
   0xc   : > { %v1417_v1 = vld [vmem:[%s1810_s1 + $0x38] sm:$0xff]   ;;  %1225 = vmatprep.subr.bf16.mxu0 %v1416_v0  ;;  %v1421_v5 = vld [vmem:[%s1810_s1 + $0x30] sm:$0xff]   ;;  %v1425_v9 = vld [vmem:[%s1810_s1 + $0x28] sm:$0xff]   ;;  %s1405_s12 = smul.u32 28, %s1818_s10  ;;  %vm728_vm1 = vcmask 130048   ;;  %s1162_s30 = sshll.u32 %s1818_s10, 3 }
   0xd   : > { %v1418_v2 = vld [vmem:[%s1810_s1 + $0xf8] sm:$0xff]   ;;  %1226 = vmatpush3.bf16.msra.mxu0 %v1417_v1  ;;  %v1422_v6 = vld [vmem:[%s1810_s1 + $0xf0] sm:$0xff]   ;;  %v1426_v10 = vld [vmem:[%s1810_s1 + $0xe8] sm:$0xff]  }
   0xe   : > { %v1419_v3 = vld [vmem:[%s1810_s1 + $0xb8] sm:$0xff]   ;;  %1247 = vmatprep.subr.bf16.mxu1 %v1418_v2  ;;  %1227 = vmatprep.subr.bf16.mxu0 %v1420_v4  ;;  %v1423_v7 = vld [vmem:[%s1810_s1 + $0xb0] sm:$0xff]   ;;  %v1427_v11 = vld [vmem:[%s1810_s1 + $0xa8] sm:$0xff]   ;;  %s1628_s22 = scalar_lea.vmem %s1809_s0, %s1405_s12  ;;  %s283_s12 = scalar_lea.vmem %s1816_s7, %s1162_s30 }
   0xf   : > { %1248 = vmatpush3.bf16.msra.mxu1 %v1419_v3  ;;  %v1428_v12 = vld [vmem:[%s1810_s1 + $0x60] sm:$0xff]   ;;  %v1432_v16 = vld [vmem:[%s1810_s1 + $0x58] sm:$0xff]   ;;  %v1436_v20 = vld [vmem:[%s1810_s1 + $0x50] sm:$0xff]  }
  0x10   : > { %1249 = vmatprep.subr.bf16.mxu1 %v1422_v6  ;;  %v1429_v13 = vld [vmem:[%s1810_s1 + $0x20] sm:$0xff]   ;;  %v1433_v17 = vld [vmem:[%s1810_s1 + $0x18] sm:$0xff]   ;;  %v1437_v21 = vld [vmem:[%s1810_s1 + $0x10] sm:$0xff]  }
  0x11   : > { %1228 = vmatpush3.bf16.msra.mxu0 %v1421_v5  ;;  %v1430_v14 = vld [vmem:[%s1810_s1 + $0xe0] sm:$0xff]   ;;  %v1434_v18 = vld [vmem:[%s1810_s1 + $0xd8] sm:$0xff]   ;;  %v1438_v22 = vld [vmem:[%s1810_s1 + $0xd0] sm:$0xff]  }
  0x12   : > { %1229 = vmatprep.subr.bf16.mxu0 %v1424_v8  ;;  %v1431_v15 = vld [vmem:[%s1810_s1 + $0xa0] sm:$0xff]   ;;  %v1435_v19 = vld [vmem:[%s1810_s1 + $0x98] sm:$0xff]   ;;  %v1439_v23 = vld [vmem:[%s1810_s1 + $0x90] sm:$0xff]  }
  0x13   : > { %1250 = vmatpush3.bf16.msra.mxu1 %v1423_v7  ;;  %v1440_v24 = vld [vmem:[%s1810_s1 + $0x48] sm:$0xff]   ;;  %v1444_v28 = vld [vmem:[%s1810_s1 + $0x40] sm:$0xff]   ;;  %v1451_v34 = vld [vmem:[%s1810_s1 + $0x178] sm:$0xff]  }
  0x14   : > { %1251 = vmatprep.subr.bf16.mxu1 %v1426_v10  ;;  %v1441_v25 = vld [vmem:[%s1810_s1 + $0x8] sm:$0xff]   ;;  %v1445_v29 = vld [vmem:[%s1810_s1] sm:$0xff]   ;;  %v1455_v37 = vld [vmem:[%s1810_s1 + $0x138] sm:$0xff]  }
  0x15   : > { %1230 = vmatpush3.bf16.msra.mxu0 %v1425_v9  ;;  %v1442_v26 = vld [vmem:[%s1810_s1 + $0xc8] sm:$0xff]   ;;  %v1446_v30 = vld [vmem:[%s1810_s1 + $0xc0] sm:$0xff]   ;;  %v1456_v39 = vld [vmem:[%s1810_s1 + $0x170] sm:$0xff]  }
  0x16   : > { %1231 = vmatprep.subr.bf16.mxu0 %v1428_v12  ;;  %v1443_v27 = vld [vmem:[%s1810_s1 + $0x88] sm:$0xff]   ;;  %v1447_v31 = vld [vmem:[%s1628_s22] ss:$28 sps:$4 sm:$0xff]   ;;  %v1457_v40 = vld [vmem:[%s1810_s1 + $0x130] sm:$0xff]  }
  0x17   : > { %1252 = vmatpush3.bf16.msra.mxu1 %v1427_v11  ;;  %v1449_v32 = vld [vmem:[%s1628_s22 + $0x4] ss:$28 sps:$4 sm:$0xff]   ;;  %v1454_v36 = vld [vmem:[%s1628_s22 + $0xc] ss:$28 sps:$4 sm:$0xff]   ;;  %v1462_v45 = vld [vmem:[%s1810_s1 + $0x158] sm:$0xff]  }
  0x18   : > { %1253 = vmatprep.subr.bf16.mxu1 %v1430_v14  ;;  %v1450_v33 = vld [vmem:[%s1810_s1 + $0x80] sm:$0xff]   ;;  %764 = vmatprep.mubr.bf16.mxu0 %v1449_v32  ;;  %v1458_v41 = vld [vmem:[%s1810_s1 + $0x168] sm:$0xff]   ;;  %v1463_v46 = vld [vmem:[%s1810_s1 + $0x118] sm:$0xff]  }
  0x19   : > { %1232 = vmatpush3.bf16.msra.mxu0 %v1429_v13  ;;  %v1452_v35 = vld [vmem:[%s1628_s22 + $0x8] ss:$28 sps:$4 sm:$0xff]   ;;  %805 = vmatprep.mubr.bf16.mxu1 %v1454_v36  ;;  %v1464_v47 = vld [vmem:[%s1810_s1 + $0x150] sm:$0xff]   ;;  %v913_v57 = vld [vmem:[%s1812_s3 + $0x78] sm:$0xff] }
  0x1a   : > { %1233 = vmatprep.subr.bf16.mxu0 %v1432_v16  ;;  %v1459_v42 = vld [vmem:[%s1810_s1 + $0x128] sm:$0xff]   ;;  %v1460_v43 = vld [vmem:[%s1810_s1 + $0x160] sm:$0xff]   ;;  %v1473_v49 = vld [vmem:[%s1628_s22 + $0x14] ss:$28 sps:$4 sm:$0xff]  }
  0x1b   : > { %1254 = vmatpush3.bf16.msra.mxu1 %v1431_v15  ;;  %v1461_v44 = vld [vmem:[%s1810_s1 + $0x120] sm:$0xff]   ;;  %v1474_v50 = vld [vmem:[%s1628_s22 + $0x18] ss:$28 sps:$4 sm:$0xff]   ;;  %v1466_v52 = vld [vmem:[%s1810_s1 + $0x148] sm:$0xff]  }
  0x1c   : > { %1255 = vmatprep.subr.bf16.mxu1 %v1434_v18  ;;  %v1470_v48 = vld [vmem:[%s1810_s1 + $0x180] sm:$0xff]   ;;  %v1465_v51 = vld [vmem:[%s1810_s1 + $0x110] sm:$0xff]   ;;  %v1467_v53 = vld [vmem:[%s1810_s1 + $0x108] sm:$0xff]  }
  0x1d   : > { %1234 = vmatpush3.bf16.msra.mxu0 %v1433_v17  ;;  %v1468_v54 = vld [vmem:[%s1810_s1 + $0x140] sm:$0xff]   ;;  %v1471_v56 = vld [vmem:[%s1628_s22 + $0x10] ss:$28 sps:$4 sm:$0xff]   ;;  %v909_v61 = vld [vmem:[%s1812_s3 + $0x58] sm:$0xff] }
  0x1e   : > { %1235 = vmatprep.subr.bf16.mxu0 %v1436_v20  ;;  %v1469_v55 = vld [vmem:[%s1810_s1 + $0x100] sm:$0xff]   ;;  %v912_v58 = vld [vmem:[%s1812_s3 + $0x70] sm:$0xff]  ;;  %v911_v59 = vld [vmem:[%s1812_s3 + $0x68] sm:$0xff] }
  0x1f   : > { %1256 = vmatpush3.bf16.msra.mxu1 %v1435_v19  ;;  %v910_v60 = vld [vmem:[%s1812_s3 + $0x60] sm:$0xff]  ;;  %v908_v62 = vld [vmem:[%s1812_s3 + $0x50] sm:$0xff]  ;;  %v907_v63 = vld [vmem:[%s1812_s3 + $0x48] sm:$0xff] }
  0x20   : > { %1257 = vmatprep.subr.bf16.mxu1 %v1438_v22  ;;  %v906_v0 = vld [vmem:[%s1812_s3 + $0x40] sm:$0xff]  ;;  %v905_v1 = vld [vmem:[%s1812_s3 + $0x38] sm:$0xff]  ;;  %v904_v2 = vld [vmem:[%s1812_s3 + $0x30] sm:$0xff] }
  0x21   : > { %1236 = vmatpush3.bf16.msra.mxu0 %v1437_v21  ;;  %v903_v3 = vld [vmem:[%s1812_s3 + $0x28] sm:$0xff]  ;;  %v902_v4 = vld [vmem:[%s1812_s3 + $0x20] sm:$0xff]  ;;  %v901_v5 = vld [vmem:[%s1812_s3 + $0x18] sm:$0xff] }
  0x22   : > { %1237 = vmatprep.subr.bf16.mxu0 %v1440_v24  ;;  %v900_v6 = vld [vmem:[%s1812_s3 + $0x10] sm:$0xff]  ;;  %v899_v7 = vld [vmem:[%s1812_s3 + $0x8] sm:$0xff]  ;;  %v898_v8 = vld [vmem:[%s1812_s3] sm:$0xff] }
  0x23   : > { %1258 = vmatpush3.bf16.msra.mxu1 %v1439_v23  ;;  %v1013_v9 = vld [vmem:[%s1814_s5 + $0x78] sm:$0xff]  ;;  %v1012_v10 = vld [vmem:[%s1814_s5 + $0x70] sm:$0xff]  ;;  %v1011_v11 = vld [vmem:[%s1814_s5 + $0x68] sm:$0xff] }
  0x24   : > { %1259 = vmatprep.subr.bf16.mxu1 %v1442_v26  ;;  %v1010_v12 = vld [vmem:[%s1814_s5 + $0x60] sm:$0xff]  ;;  %v1009_v13 = vld [vmem:[%s1814_s5 + $0x58] sm:$0xff]  ;;  %v1008_v14 = vld [vmem:[%s1814_s5 + $0x50] sm:$0xff] }
  0x25   : > { %1238 = vmatpush3.bf16.msra.mxu0 %v1441_v25  ;;  %v1007_v15 = vld [vmem:[%s1814_s5 + $0x48] sm:$0xff]  ;;  %v1006_v16 = vld [vmem:[%s1814_s5 + $0x40] sm:$0xff]  ;;  %v1005_v17 = vld [vmem:[%s1814_s5 + $0x38] sm:$0xff] }
  0x26   : > { %1239 = vmatprep.subr.bf16.mxu0 %v1444_v28  ;;  %v1004_v18 = vld [vmem:[%s1814_s5 + $0x30] sm:$0xff]  ;;  %v1003_v19 = vld [vmem:[%s1814_s5 + $0x28] sm:$0xff]  ;;  %v1002_v20 = vld [vmem:[%s1814_s5 + $0x20] sm:$0xff] }
  0x27   : > { %1260 = vmatpush3.bf16.msra.mxu1 %v1443_v27 }
  0x28   : > { %1261 = vmatprep.subr.bf16.mxu1 %v1446_v30 }
  0x29   : > { %1240 = vmatpush3.bf16.msra.mxu0 %v1445_v29 }
  0x2a   : > { %1269 = vmatprep.subr.bf16.mxu0 %v1451_v34 }
  0x2b   : > { %1262 = vmatpush3.bf16.msra.mxu1 %v1450_v33  ;;  %v1163_v33 = vld [vmem:[%s1811_s2] ss:$0 sm:$0xff] }
  0x2c   : > { %765 = vmatmul.mubr.bf16.vlgmr.msra.gmra.mxu0 %v1447_v31  ;;  %1329 = vmatprep.subr.bf16.mxu1 %v1483_v38 }
  0x2d   : > { %1270 = vmatpush3.bf16.msra.mxu0 %v1455_v37  ;;  %846 = vmatprep.mubr.bf16.mxu0 %v1473_v49 }
  0x2e   : > { %806 = vmatmul.mubr.bf16.vlgmr.msra.gmra.mxu1 %v1452_v35  ;;  %1271 = vmatprep.subr.bf16.mxu0 %v1456_v39 }
  0x2f   : > { %1331 = vmatprep.mubr.msk.bf16.mxu1 %vm1484_vm0, %v1483_v38  ;;  %1330 = vmatpush3.bf16.msra.mxu1 %v1470_v48 }
  0x30   : > { %1335 = vmatprep.subr.mxu1 %v913_v57 }
  0x31   : > { %1272 = vmatpush3.bf16.msra.mxu0 %v1457_v40 }
  0x32   : > { %1273 = vmatprep.subr.bf16.mxu0 %v1458_v41 }
  0x35   : > { %1274 = vmatpush3.bf16.msra.mxu0 %v1459_v42 }
  0x36   : > { %1275 = vmatprep.subr.bf16.mxu0 %v1460_v43  ;;  %1332 = vmatmul.mubr.msk.bf16.vlgmr.msra.gmra.mxu1 %vm728_vm1, %v1474_v50 }
  0x37   : > { %1336 = vmatpush3.msra.mxu1 %v913_v57  ;;  %v998_v57 = vld [vmem:[%s1814_s5] sm:$0xff] }
  0x38   : > { %1337 = vmatprep.subr.mxu1 %v912_v58 }
  0x39   : > { %1276 = vmatpush3.bf16.msra.mxu0 %v1461_v44  ;;  %1338 = vmatpush3.msra.mxu1 %v912_v58  ;;  %v1221_v58 = vld [vmem:[%s1813_s4] ss:$0 sm:$0xff] }
  0x3a   : > { %1277 = vmatprep.subr.bf16.mxu0 %v1462_v45  ;;  %1339 = vmatprep.subr.mxu1 %v911_v59 }
  0x3b   : > { %1340 = vmatpush3.msra.mxu1 %v911_v59 }
  0x3c   : > { %1341 = vmatprep.subr.mxu1 %v910_v60 }
  0x3d   : > { %1278 = vmatpush3.bf16.msra.mxu0 %v1463_v46  ;;  %1342 = vmatpush3.msra.mxu1 %v910_v60 }
  0x3e   : > { %1279 = vmatprep.subr.bf16.mxu0 %v1464_v47  ;;  %1343 = vmatprep.subr.mxu1 %v909_v61 }
  0x3f   : > { %1344 = vmatpush3.msra.mxu1 %v909_v61 }
  0x40   : > { %1345 = vmatprep.subr.mxu1 %v908_v62 }
  0x41   : > { %1280 = vmatpush3.bf16.msra.mxu0 %v1465_v51  ;;  %1346 = vmatpush3.msra.mxu1 %v908_v62 }
  0x42   : > { %1281 = vmatprep.subr.bf16.mxu0 %v1466_v52  ;;  %1347 = vmatprep.subr.mxu1 %v907_v63 }
  0x43   : > { %1348 = vmatpush3.msra.mxu1 %v907_v63 }
  0x44   : > { %1349 = vmatprep.subr.mxu1 %v906_v0 }
  0x45   : > { %1282 = vmatpush3.bf16.msra.mxu0 %v1467_v53  ;;  %1350 = vmatpush3.msra.mxu1 %v906_v0 }
  0x46   : > { %1283 = vmatprep.subr.bf16.mxu0 %v1468_v54  ;;  %1351 = vmatprep.subr.mxu1 %v905_v1  ;;  %v1001_v54 = vld [vmem:[%s1814_s5 + $0x18] sm:$0xff] }
  0x47   : > { %1352 = vmatpush3.msra.mxu1 %v905_v1 }
  0x48   : > { %1353 = vmatprep.subr.mxu1 %v904_v2 }
  0x49   : > { %1284 = vmatpush3.bf16.msra.mxu0 %v1469_v55  ;;  %1354 = vmatpush3.msra.mxu1 %v904_v2  ;;  %v1000_v55 = vld [vmem:[%s1814_s5 + $0x10] sm:$0xff]  ;;  %v1222_v2 = vld [vmem:[%s1815_s6] ss:$0 sm:$0xff] }
  0x4a   : > { %1355 = vmatprep.subr.mxu1 %v903_v3  ;;  %1370 = vmatprep.subr.mxu0 %v1013_v9 }
  0x4b   : > { %1356 = vmatpush3.msra.mxu1 %v903_v3 }
  0x4c   : > { %847 = vmatmul.mubr.bf16.vlgmr.msra.gmra.mxu0 %v1471_v56  ;;  %1357 = vmatprep.subr.mxu1 %v902_v4  ;;  %v999_v56 = vld [vmem:[%s1814_s5 + $0x8] sm:$0xff] }
  0x4d   : > { %1358 = vmatpush3.msra.mxu1 %v902_v4  ;;  %1371 = vmatpush3.msra.mxu0 %v1013_v9 }
  0x4e   : > { %1359 = vmatprep.subr.mxu1 %v901_v5  ;;  %1372 = vmatprep.subr.mxu0 %v1012_v10 }
  0x4f   : > { %1360 = vmatpush3.msra.mxu1 %v901_v5  ;;  %1373 = vmatpush3.msra.mxu0 %v1012_v10 }
  0x50   : > { %1361 = vmatprep.subr.mxu1 %v900_v6  ;;  %1374 = vmatprep.subr.mxu0 %v1011_v11 }
  0x51   : > { %1362 = vmatpush3.msra.mxu1 %v900_v6  ;;  %1375 = vmatpush3.msra.mxu0 %v1011_v11 }
  0x52   : > { %1363 = vmatprep.subr.mxu1 %v899_v7  ;;  %1376 = vmatprep.subr.mxu0 %v1010_v12 }
  0x53   : > { %1364 = vmatpush3.msra.mxu1 %v899_v7  ;;  %1377 = vmatpush3.msra.mxu0 %v1010_v12 }
  0x54   : > { %1365 = vmatprep.subr.mxu1 %v898_v8  ;;  %1378 = vmatprep.subr.mxu0 %v1009_v13 }
  0x55   : > { %1366 = vmatpush3.msra.mxu1 %v898_v8  ;;  %1379 = vmatpush3.msra.mxu0 %v1009_v13 }
  0x56   : > { %1380 = vmatprep.subr.mxu0 %v1008_v14 }
  0x57   : > { %1381 = vmatpush3.msra.mxu0 %v1008_v14 }
  0x58   : > { %1382 = vmatprep.subr.mxu0 %v1007_v15 }
  0x59   : > { %1383 = vmatpush3.msra.mxu0 %v1007_v15 }
  0x5a   : > { %1384 = vmatprep.subr.mxu0 %v1006_v16 }
  0x5b   : > { %1385 = vmatpush3.msra.mxu0 %v1006_v16 }
  0x5c   : > { %1386 = vmatprep.subr.mxu0 %v1005_v17 }
  0x5d   : > { %1387 = vmatpush3.msra.mxu0 %v1005_v17 }
  0x5e   : > { %1388 = vmatprep.subr.mxu0 %v1004_v18 }
  0x5f   : > { %1389 = vmatpush3.msra.mxu0 %v1004_v18 }
  0x60   : > { %1390 = vmatprep.subr.mxu0 %v1003_v19 }
  0x61   : > { %1391 = vmatpush3.msra.mxu0 %v1003_v19 }
  0x62   : > { %1392 = vmatprep.subr.mxu0 %v1002_v20 }
  0x63   : > { %1393 = vmatpush3.msra.mxu0 %v1002_v20 }
  0x64   : > { %1394 = vmatprep.subr.mxu0 %v1001_v54 }
  0x65   : > { %1395 = vmatpush3.msra.mxu0 %v1001_v54 }
  0x66   : > { %1396 = vmatprep.subr.mxu0 %v1000_v55 }
  0x67   : > { %1397 = vmatpush3.msra.mxu0 %v1000_v55 }
  0x68   : > { %1398 = vmatprep.subr.mxu0 %v999_v56 }
  0x69   : > { %1399 = vmatpush3.msra.mxu0 %v999_v56 }
  0x6a   : > { %1400 = vmatprep.subr.mxu0 %v998_v57 }
  0x6b   : > { %1401 = vmatpush3.msra.mxu0 %v998_v57 }
  0xec   : > { %v1241_v24 = vpop.f32.mrf.mxu0 }
  0xee   : > { %v1263_v21 = vpop.f32.mrf.mxu1  ;;  %v1242_v27 = vpop.f32.mrf.mxu0 }
  0xef   : > { %v1243_v32 = vadd.f32 %v1242_v27, %v1241_v24 }
  0xf0   : > { %v1264_v22 = vpop.f32.mrf.mxu1  ;;  %v1244_v30 = vpop.f32.mrf.mxu0 }
  0xf1   : > { %v767_v35 = vadd.f32 %v1243_v32, %v1163_v33  ;;  %v1265_v36 = vadd.f32 %v1264_v22, %v1263_v21 }
  0xf2   : > { %v1266_v23 = vpop.f32.mrf.mxu1  ;;  %v1245_v34 = vpop.f32.mrf.mxu0 }
  0xf3   : > { %v1246_v37 = vadd.f32 %v1245_v34, %v1244_v30  ;;  %v808_v40 = vadd.f32 %v1265_v36, %v767_v35 }
  0xf4   : > { %v1267_v25 = vpop.f32.mrf.mxu1 }
  0xf5   : > { %v770_v41 = vadd.f32 %v1246_v37, %v1163_v33  ;;  %v1268_v42 = vadd.f32 %v1267_v25, %v1266_v23 }
  0xf6   : > { %v889_v26 = vpop.f32.mrf.mxu1 }
  0xf7   : > { %v811_v47 = vadd.f32 %v1268_v42, %v770_v41 }
  0xf8   : > { %v1333_v28 = vpop.f32.mrf.mxu1 }
  0xfa   : > { %v892_v29 = vpop.f32.mrf.mxu1 }
  0xfc   : > { %v1334_v31 = vpop.f32.mrf.mxu1 }
 0x10c   : > { %v1285_v38 = vpop.f32.mrf.mxu0 }
 0x10e   : > { %v1286_v39 = vpop.f32.mrf.mxu0 }
 0x10f   : > { %v1287_v43 = vadd.f32 %v1286_v39, %v1285_v38 }
 0x110   : > { %v1288_v44 = vpop.f32.mrf.mxu0 }
 0x111   : > { %v849_v45 = vadd.f32 %v1287_v43, %v808_v40 }
 0x112   : > { %v1289_v46 = vpop.f32.mrf.mxu0 }
 0x113   : > { %v1290_v48 = vadd.f32 %v1289_v46, %v1288_v44  ;;  %v890_v49 = vadd.f32 %v889_v26, %v849_v45 }
 0x115   : > { %v852_v50 = vadd.f32 %v1290_v48, %v811_v47  ;;  %v896_v51 = vmax.f32 %v890_v49, 0.0 }
 0x117   : > { %v893_v52 = vadd.f32 %v892_v29, %v852_v50  ;;  %1367 = vmatprep.mubr.f32.mxu1 %v896_v51 }
 0x119   : > { %v897_v53 = vmax.f32 %v893_v52, 0.0 }
 0x11b   : > { %1368 = vmatmul.mubr.f32.vlgmr.msra.gmra.mxu1 %v897_v53 }
 0x1db   : > { %v1369_v59 = vpop.f32.mrf.mxu1 }
 0x1dc   : > { %v993_v60 = vadd.f32 %v1369_v59, %v1221_v58 }
 0x1dd   : > { %v987_v61 = vpop.f32.mrf.mxu1 }
 0x1de   : > { %v988_v62 = vadd.f32 %v1221_v58, %v987_v61  ;;  %v997_v0 = vmax.f32 %v993_v60, 0.0 }
 0x1e0   : > { %v996_v63 = vmax.f32 %v988_v62, 0.0 }
 0x1e2   : > { %1402 = vmatprep.mubr.f32.mxu0 %v996_v63 }
 0x1e3   : > { %1403 = vmatmul.mubr.f32.vlgmr.msra.gmra.mxu0 %v997_v0 }
 0x2a3   : > { %v1404_v1 = vpop.f32.mrf.mxu0 }
 0x2a4   : > { %v1093_v5 = vadd.f32 %v1404_v1, %v1222_v2 }
 0x2a5   : > { %v1087_v3 = vpop.f32.mrf.mxu0 }
 0x2a6   : > { %v1088_v4 = vadd.f32 %v1222_v2, %v1087_v3  ;;  %1097 = vst [vmem:[%s283_s12 + $0x8] sm:$0xff] %v1093_v5 }
 0x2a8   : > { %1096 = vst [vmem:[%s283_s12] sm:$0xff] %v1088_v4 }
 0x2a9 PF: > { %s17_s24 = sadd.s32 1, %s1481_s24  }
 0x2aa   : > { %p14_p4 = scmp.ge.s32.totalorder %s17_s24, 6  }
 0x2ac   :  { %16 = sbr.rel (!%p14_p4) target bundleno = 1 (0x1), region = 78 }

</bundles_post_ra>
